<compile_context>
chip_gen: v7x
topology: tpu7x:2x2x1
jax: 0.10.0
libtpu: 0.0.40
codegen_flags: <defaults>
</compile_context>

<pallas_src>
import jax
import jax.numpy as jnp
from jax import lax
from jax.experimental import pallas as pl
from jax.experimental.pallas import tpu as pltpu


# ----------------------------------------------------------------------------
# Fused kernel: upsample+1x1, concat, [conv3x3 + folded BN + ReLU] x 2.
# ----------------------------------------------------------------------------
def _decoder_kernel(x_ref, skip_ref, ah_ref, bw_ref, bup_ref,
                    b1_ref, s1_ref, t1_ref, b2_ref, s2_ref, t2_ref,
                    out_ref):
    f32, bf16 = jnp.float32, jnp.bfloat16
    Nb = x_ref.shape[0]
    HO = skip_ref.shape[1]
    z1 = jnp.zeros((1, b1_ref.shape[1]), f32)   # zero halo row, conv-1 input
    z2 = jnp.zeros((1, b2_ref.shape[1]), f32)   # zero halo row, conv-2 input

    for b in range(Nb):                          # static unroll over the block
        # ---- stage 1: separable bilinear x2 + 1x1 projection (f32, tiny) ----
        x = x_ref[b]                                                  # (H, W*Cin)
        xh = jnp.dot(ah_ref[...], x, preferred_element_type=f32)     # (HO, W*Cin)
        up = jnp.dot(xh, bw_ref[...], preferred_element_type=f32) + bup_ref[...]
        # up: (HO, WO*Cout)

        # ---- conv3x3 #1 on concat(skip, up): 3 banded bf16 MXU matmuls ------
        # Lane layout of the conv-1 input is [skip-block | up-block]; the band
        # matrix b1 is built for exactly this layout (no per-pixel interleave).
        cat = jnp.concatenate([skip_ref[b], up], axis=1)              # (HO, WO*Cc)
        p1 = jnp.concatenate([z1, cat, z1], axis=0)                   # (HO+2, WO*Cc)
        acc = jnp.dot(p1[0:HO].astype(bf16), b1_ref[0],
                      preferred_element_type=f32)
        acc += jnp.dot(p1[1:HO + 1].astype(bf16), b1_ref[1],
                       preferred_element_type=f32)
        acc += jnp.dot(p1[2:HO + 2].astype(bf16), b1_ref[2],
                       preferred_element_type=f32)
        h1 = jnp.maximum(acc * s1_ref[...] + t1_ref[...], 0.0)        # (HO, WO*Cmid)

        # ---- conv3x3 #2: same banded structure -------------------------------
        p2 = jnp.concatenate([z2, h1, z2], axis=0)                    # (HO+2, WO*Cmid)
        acc = jnp.dot(p2[0:HO].astype(bf16), b2_ref[0],
                      preferred_element_type=f32)
        acc += jnp.dot(p2[1:HO + 1].astype(bf16), b2_ref[1],
                       preferred_element_type=f32)
        acc += jnp.dot(p2[2:HO + 2].astype(bf16), b2_ref[2],
                       preferred_element_type=f32)
        out_ref[b] = jnp.maximum(acc * s2_ref[...] + t2_ref[...], 0.0)


# ----------------------------------------------------------------------------
# Host-side weight transforms
# ----------------------------------------------------------------------------
def _band_matrix(w_kw, WO):
    """w_kw: (kw=3, Ci, Co) taps of one kh row -> banded (WO*Ci, WO*Co) matrix.

    B[jin*Ci + ci, jout*Co + co] = w_kw[jin - jout + 1, ci, co]  (0 outside band)
    which reproduces a padding=1, 3-tap correlation along W with the W axis fused
    into the matmul N dimension (lane-dense output).
    """
    kw, Ci, Co = w_kw.shape
    jin = jnp.arange(WO)[:, None]
    jout = jnp.arange(WO)[None, :]
    dx = jin - jout + 1                                    # (WO, WO)
    valid = (dx >= 0) & (dx < kw)
    blocks = w_kw[jnp.clip(dx, 0, kw - 1)]                 # (WO, WO, Ci, Co)
    blocks = blocks * valid[:, :, None, None].astype(w_kw.dtype)
    return blocks.transpose(0, 2, 1, 3).reshape(WO * Ci, WO * Co)


# ----------------------------------------------------------------------------
# Wrapper
# ----------------------------------------------------------------------------
def decoder_block(batch, skip, params, *, batch_per_step=1):
    """DecoderBlock forward (bilinear=True, inference-mode folded BN)."""
    N, H, W, Cin = batch.shape
    _, HO, WO, Cskip = skip.shape
    AH, AW = params["AH"], params["AW"]
    wup, bup = params["wup"], params["bup"]
    w1, s1, t1 = params["w1"], params["s1"], params["t1"]
    w2, s2, t2 = params["w2"], params["s2"], params["t2"]
    Cc, Cmid = w1.shape[2], w1.shape[3]
    Cout = w2.shape[3]
    assert Cskip + Cout == Cc
    assert AH.shape == (HO, H) and AW.shape == (WO, W)
    Nb = batch_per_step
    assert N % Nb == 0
    f32, bf16 = jnp.float32, jnp.bfloat16

    # stage-1 fused weight (kept f32: tiny, keeps the interpolation exact).
    # W-interp and the 1x1 projection commute -> one matrix:
    #   BW[w*Cin+ci, J*Cout+co] = AW[J, w] * wup[ci, co]  ( = kron(AW.T, wup) ).
    # TODO(synk): at large W*Cin split the W-interp from the 1x1 projection.
    BW = jnp.kron(AW.T, wup).astype(f32)                   # (W*Cin, WO*Cout)
    bup_row = jnp.tile(bup, WO).reshape(1, WO * Cout).astype(f32)

    # banded conv weights (bf16 MXU operands).
    # conv-1 input lanes: [ skip: jin*Cskip+ci | up: WO*Cskip + jin*Cout+cu ].
    B1 = jnp.stack([
        jnp.concatenate([_band_matrix(w1[dy, :, :Cskip, :], WO),
                         _band_matrix(w1[dy, :, Cskip:, :], WO)], axis=0)
        for dy in range(3)]).astype(bf16)                  # (3, WO*Cc, WO*Cmid)
    B2 = jnp.stack([_band_matrix(w2[dy], WO)
                    for dy in range(3)]).astype(bf16)      # (3, WO*Cmid, WO*Cout)

    # folded-BN scale/bias broadcast over the fused (j, c) lane axis.
    s1r = jnp.tile(s1, WO).reshape(1, WO * Cmid).astype(f32)
    t1r = jnp.tile(t1, WO).reshape(1, WO * Cmid).astype(f32)
    s2r = jnp.tile(s2, WO).reshape(1, WO * Cout).astype(f32)
    t2r = jnp.tile(t2, WO).reshape(1, WO * Cout).astype(f32)

    # lane-dense views (free row-major reshapes).
    batch_f = batch.reshape(N, H, W * Cin)
    skip_f = skip.reshape(N, HO, WO * Cskip)

    out_flat = pl.pallas_call(
        _decoder_kernel,
        out_shape=jax.ShapeDtypeStruct((N, HO, WO * Cout), jnp.float32),
        grid_spec=pltpu.PrefetchScalarGridSpec(
            num_scalar_prefetch=0,
            grid=(N // Nb,),
            in_specs=[
                pl.BlockSpec((Nb, H, W * Cin), lambda n: (n, 0, 0)),
                pl.BlockSpec((Nb, HO, WO * Cskip), lambda n: (n, 0, 0)),
                pl.BlockSpec((HO, H), lambda n: (0, 0)),
                pl.BlockSpec((W * Cin, WO * Cout), lambda n: (0, 0)),
                pl.BlockSpec((1, WO * Cout), lambda n: (0, 0)),
                pl.BlockSpec((3, WO * Cc, WO * Cmid), lambda n: (0, 0, 0)),
                pl.BlockSpec((1, WO * Cmid), lambda n: (0, 0)),
                pl.BlockSpec((1, WO * Cmid), lambda n: (0, 0)),
                pl.BlockSpec((3, WO * Cmid, WO * Cout), lambda n: (0, 0, 0)),
                pl.BlockSpec((1, WO * Cout), lambda n: (0, 0)),
                pl.BlockSpec((1, WO * Cout), lambda n: (0, 0)),
            ],
            out_specs=pl.BlockSpec((Nb, HO, WO * Cout), lambda n: (n, 0, 0)),
        ),
        compiler_params=pltpu.CompilerParams(
            dimension_semantics=("parallel",),
            vmem_limit_bytes=32 * 1024 * 1024),
    )(batch_f, skip_f, AH.astype(f32), BW, bup_row,
      B1, s1r, t1r, B2, s2r, t2r)

    # (N, HO, WO*Cout) -> (N, HO, WO, Cout): free row-major metadata reshape.
    return out_flat.reshape(N, HO, WO, Cout)


# ----------------------------------------------------------------------------
# Glue: bilinear interpolation matrices (align_corners=True), BN folding,
# and a pure-JAX reference for validation.
# ----------------------------------------------------------------------------
def bilinear_matrix(n_in, n_out):
    if n_in == 1:
        return jnp.ones((n_out, 1), jnp.float32)
    src = jnp.arange(n_out, dtype=jnp.float32) * (n_in - 1) / (n_out - 1)
    i0 = jnp.clip(jnp.floor(src).astype(jnp.int32), 0, n_in - 2)
    frac = src - i0.astype(jnp.float32)
    rows = jnp.arange(n_out)
    A = jnp.zeros((n_out, n_in), jnp.float32)
    A = A.at[rows, i0].add(1.0 - frac)
    A = A.at[rows, i0 + 1].add(frac)
    return A


def fold_bn(conv_bias, gamma, beta, mean, var, eps=1e-5):
    scale = gamma / jnp.sqrt(var + eps)
    bias = conv_bias * scale + beta - mean * scale
    return scale, bias


def reference(batch, skip, AH, AW, wup, bup, w1, s1, t1, w2, s2, t2):
    up = jnp.einsum("Ih,nhwc->nIwc", AH, batch)
    up = jnp.einsum("Jw,nIwc->nIJc", AW, up)
    up = jnp.einsum("nijc,cd->nijd", up, wup) + bup.reshape(1, 1, 1, -1)
    cat = jnp.concatenate([skip, up], axis=-1)
    dn = ("NHWC", "HWIO", "NHWC")
    c1 = lax.conv_general_dilated(cat, w1, (1, 1), "SAME", dimension_numbers=dn)
    h1 = jnp.maximum(c1 * s1.reshape(1, 1, 1, -1) + t1.reshape(1, 1, 1, -1), 0.0)
    c2 = lax.conv_general_dilated(h1, w2, (1, 1), "SAME", dimension_numbers=dn)
    return jnp.maximum(c2 * s2.reshape(1, 1, 1, -1) + t2.reshape(1, 1, 1, -1), 0.0)


if __name__ == "__main__":
    # DecoderBlock(in_channels=8, out_channels=4, bilinear=True)
    in_channels, out_channels = 8, 4
    mid_channels = out_channels
    skip_channels = in_channels - out_channels
    N, H, W = 2, 8, 8
    HO, WO = 2 * H, 2 * W

    keys = jax.random.split(jax.random.PRNGKey(0), 16)
    batch = jax.random.normal(keys[0], (N, H, W, in_channels), jnp.float32)
    skip = jax.random.normal(keys[1], (N, HO, WO, skip_channels), jnp.float32)

    # upsample path: 1x1 conv params
    wup = 0.1 * jax.random.normal(keys[2], (in_channels, out_channels), jnp.float32)
    bup = 0.05 * jax.random.normal(keys[3], (out_channels,), jnp.float32)

    # conv_block layer 1: Conv3x3(in_channels -> mid_channels) + BN
    w1 = 0.1 * jax.random.normal(keys[4], (3, 3, in_channels, mid_channels), jnp.float32)
    b1 = 0.05 * jax.random.normal(keys[5], (mid_channels,), jnp.float32)
    g1 = 1.0 + 0.1 * jax.random.normal(keys[6], (mid_channels,), jnp.float32)
    be1 = 0.05 * jax.random.normal(keys[7], (mid_channels,), jnp.float32)
    m1 = 0.05 * jax.random.normal(keys[8], (mid_channels,), jnp.float32)
    v1 = 0.9 + 0.2 * jax.random.uniform(keys[9], (mid_channels,), jnp.float32)
    s1, t1 = fold_bn(b1, g1, be1, m1, v1)

    # conv_block layer 2: Conv3x3(mid_channels -> out_channels) + BN
    w2 = 0.1 * jax.random.normal(keys[10], (3, 3, mid_channels, out_channels), jnp.float32)
    b2 = 0.05 * jax.random.normal(keys[11], (out_channels,), jnp.float32)
    g2 = 1.0 + 0.1 * jax.random.normal(keys[12], (out_channels,), jnp.float32)
    be2 = 0.05 * jax.random.normal(keys[13], (out_channels,), jnp.float32)
    m2 = 0.05 * jax.random.normal(keys[14], (out_channels,), jnp.float32)
    v2 = 0.9 + 0.2 * jax.random.uniform(keys[15], (out_channels,), jnp.float32)
    s2, t2 = fold_bn(b2, g2, be2, m2, v2)

    # separable bilinear interpolation matrices (align_corners=True)
    AH = bilinear_matrix(H, HO)
    AW = bilinear_matrix(W, WO)

    params = dict(AH=AH, AW=AW, wup=wup, bup=bup,
                  w1=w1, s1=s1, t1=t1, w2=w2, s2=s2, t2=t2)

    # batch_per_step=1 -> grid=(2,), keeps both v7x TensorCores busy; raise it on
    # single-TC chips with larger N to amortize per-step overhead.
    out = decoder_block(batch, skip, params, batch_per_step=1)
    out = jax.block_until_ready(out)

    ref = reference(batch, skip, AH, AW, wup, bup, w1, s1, t1, w2, s2, t2)
    assert out.shape == (N, HO, WO, out_channels)
    # bf16 conv operands (f32 accumulation, f32 upsample) -> relaxed tolerance.
    assert jnp.allclose(out, ref, rtol=3e-2, atol=3e-2), "kernel mismatch vs reference"

    print("KERNEL_OK")
</pallas_src>

<mosaic_0001>
module attributes {stable_mosaic.version = 11 : i64} {
  func.func @_decoder_kernel(%arg0: i32, %arg1: memref<1x8x64xf32, #tpu.memory_space<vmem>>, %arg2: memref<1x16x64xf32, #tpu.memory_space<vmem>>, %arg3: memref<16x8xf32, #tpu.memory_space<vmem>>, %arg4: memref<64x64xf32, #tpu.memory_space<vmem>>, %arg5: memref<1x64xf32, #tpu.memory_space<vmem>>, %arg6: memref<3x128x64xbf16, #tpu.memory_space<vmem>>, %arg7: memref<1x64xf32, #tpu.memory_space<vmem>>, %arg8: memref<1x64xf32, #tpu.memory_space<vmem>>, %arg9: memref<3x64x64xbf16, #tpu.memory_space<vmem>>, %arg10: memref<1x64xf32, #tpu.memory_space<vmem>>, %arg11: memref<1x64xf32, #tpu.memory_space<vmem>>, %arg12: memref<1x16x64xf32, #tpu.memory_space<vmem>>) attributes {dimension_semantics = [#tpu.dimension_semantics<parallel>], iteration_bounds = array<i64: 2>, scalar_prefetch = 0 : i64, scratch_operands = 0 : i64, tpu.core_type = #tpu.core_type<tc>, window_params = [{transform_indices = @transform_0, window_bounds = array<i64: 1, 8, 64>}, {transform_indices = @transform_1, window_bounds = array<i64: 1, 16, 64>}, {pipeline_mode = #tpu.pipeline_mode<synchronous>, transform_indices = @transform_2, window_bounds = array<i64: 16, 8>}, {pipeline_mode = #tpu.pipeline_mode<synchronous>, transform_indices = @transform_3, window_bounds = array<i64: 64, 64>}, {pipeline_mode = #tpu.pipeline_mode<synchronous>, transform_indices = @transform_4, window_bounds = array<i64: 1, 64>}, {pipeline_mode = #tpu.pipeline_mode<synchronous>, transform_indices = @transform_5, window_bounds = array<i64: 3, 128, 64>}, {pipeline_mode = #tpu.pipeline_mode<synchronous>, transform_indices = @transform_6, window_bounds = array<i64: 1, 64>}, {pipeline_mode = #tpu.pipeline_mode<synchronous>, transform_indices = @transform_7, window_bounds = array<i64: 1, 64>}, {pipeline_mode = #tpu.pipeline_mode<synchronous>, transform_indices = @transform_8, window_bounds = array<i64: 3, 64, 64>}, {pipeline_mode = #tpu.pipeline_mode<synchronous>, transform_indices = @transform_9, window_bounds = array<i64: 1, 64>}, {pipeline_mode = #tpu.pipeline_mode<synchronous>, transform_indices = @transform_10, window_bounds = array<i64: 1, 64>}, {transform_indices = @transform_11, window_bounds = array<i64: 1, 16, 64>}]} {
    %cst = arith.constant 0.000000e+00 : f32
    %0 = vector.broadcast %cst : f32 to vector<1x128xf32>
    %cst_0 = arith.constant 0.000000e+00 : f32
    %1 = vector.broadcast %cst_0 : f32 to vector<1x64xf32>
    %c0 = arith.constant 0 : index
    %c0_1 = arith.constant 0 : index
    %c0_2 = arith.constant 0 : index
    %2 = vector.load %arg1[%c0, %c0_1, %c0_2] : memref<1x8x64xf32, #tpu.memory_space<vmem>>, vector<1x8x64xf32>
    %3 = vector.shape_cast %2 : vector<1x8x64xf32> to vector<8x64xf32>
    %c0_3 = arith.constant 0 : index
    %c0_4 = arith.constant 0 : index
    %4 = vector.load %arg3[%c0_3, %c0_4] : memref<16x8xf32, #tpu.memory_space<vmem>>, vector<16x8xf32>
    %cst_5 = arith.constant dense<0.000000e+00> : vector<16x64xf32>
    %5 = tpu.matmul %4, %3, %cst_5 {dimension_numbers = #tpu.dot_dimension_numbers<[1], [0], [0], [1], [0, 0, 1, 1], [], []>} : vector<16x8xf32>, vector<8x64xf32>, vector<16x64xf32> -> vector<16x64xf32>
    %c0_6 = arith.constant 0 : index
    %c0_7 = arith.constant 0 : index
    %6 = vector.load %arg4[%c0_6, %c0_7] : memref<64x64xf32, #tpu.memory_space<vmem>>, vector<64x64xf32>
    %cst_8 = arith.constant dense<0.000000e+00> : vector<16x64xf32>
    %7 = tpu.matmul %5, %6, %cst_8 {dimension_numbers = #tpu.dot_dimension_numbers<[1], [0], [0], [1], [0, 0, 1, 1], [], []>} : vector<16x64xf32>, vector<64x64xf32>, vector<16x64xf32> -> vector<16x64xf32>
    %c0_9 = arith.constant 0 : index
    %c0_10 = arith.constant 0 : index
    %8 = vector.load %arg5[%c0_9, %c0_10] : memref<1x64xf32, #tpu.memory_space<vmem>>, vector<1x64xf32>
    %9 = vector.broadcast %8 : vector<1x64xf32> to vector<16x64xf32>
    %10 = arith.addf %7, %9 : vector<16x64xf32>
    %c0_11 = arith.constant 0 : index
    %c0_12 = arith.constant 0 : index
    %c0_13 = arith.constant 0 : index
    %11 = vector.load %arg2[%c0_11, %c0_12, %c0_13] : memref<1x16x64xf32, #tpu.memory_space<vmem>>, vector<1x16x64xf32>
    %12 = vector.shape_cast %11 : vector<1x16x64xf32> to vector<16x64xf32>
    %13 = tpu.concatenate %12, %10 in 1 : vector<16x64xf32>, vector<16x64xf32> -> vector<16x128xf32>
    %14 = tpu.concatenate %0, %13, %0 in 0 : vector<1x128xf32>, vector<16x128xf32>, vector<1x128xf32> -> vector<18x128xf32>
    %15 = vector.extract_strided_slice %14 {offsets = [0, 0], sizes = [16, 128], strides = [1, 1]} : vector<18x128xf32> to vector<16x128xf32>
    %16 = arith.truncf %15 : vector<16x128xf32> to vector<16x128xbf16>
    %c0_14 = arith.constant 0 : index
    %c0_15 = arith.constant 0 : index
    %c0_16 = arith.constant 0 : index
    %17 = vector.load %arg6[%c0_14, %c0_15, %c0_16] : memref<3x128x64xbf16, #tpu.memory_space<vmem>>, vector<1x128x64xbf16>
    %18 = vector.shape_cast %17 : vector<1x128x64xbf16> to vector<128x64xbf16>
    %cst_17 = arith.constant dense<0.000000e+00> : vector<16x64xf32>
    %19 = tpu.matmul %16, %18, %cst_17 {dimension_numbers = #tpu.dot_dimension_numbers<[1], [0], [0], [1], [0, 0, 1, 1], [], []>} : vector<16x128xbf16>, vector<128x64xbf16>, vector<16x64xf32> -> vector<16x64xf32>
    %20 = vector.extract_strided_slice %14 {offsets = [1, 0], sizes = [16, 128], strides = [1, 1]} : vector<18x128xf32> to vector<16x128xf32>
    %21 = arith.truncf %20 : vector<16x128xf32> to vector<16x128xbf16>
    %c1 = arith.constant 1 : index
    %c0_18 = arith.constant 0 : index
    %c0_19 = arith.constant 0 : index
    %22 = vector.load %arg6[%c1, %c0_18, %c0_19] : memref<3x128x64xbf16, #tpu.memory_space<vmem>>, vector<1x128x64xbf16>
    %23 = vector.shape_cast %22 : vector<1x128x64xbf16> to vector<128x64xbf16>
    %cst_20 = arith.constant dense<0.000000e+00> : vector<16x64xf32>
    %24 = tpu.matmul %21, %23, %cst_20 {dimension_numbers = #tpu.dot_dimension_numbers<[1], [0], [0], [1], [0, 0, 1, 1], [], []>} : vector<16x128xbf16>, vector<128x64xbf16>, vector<16x64xf32> -> vector<16x64xf32>
    %25 = arith.addf %19, %24 : vector<16x64xf32>
    %26 = vector.extract_strided_slice %14 {offsets = [2, 0], sizes = [16, 128], strides = [1, 1]} : vector<18x128xf32> to vector<16x128xf32>
    %27 = arith.truncf %26 : vector<16x128xf32> to vector<16x128xbf16>
    %c2 = arith.constant 2 : index
    %c0_21 = arith.constant 0 : index
    %c0_22 = arith.constant 0 : index
    %28 = vector.load %arg6[%c2, %c0_21, %c0_22] : memref<3x128x64xbf16, #tpu.memory_space<vmem>>, vector<1x128x64xbf16>
    %29 = vector.shape_cast %28 : vector<1x128x64xbf16> to vector<128x64xbf16>
    %cst_23 = arith.constant dense<0.000000e+00> : vector<16x64xf32>
    %30 = tpu.matmul %27, %29, %cst_23 {dimension_numbers = #tpu.dot_dimension_numbers<[1], [0], [0], [1], [0, 0, 1, 1], [], []>} : vector<16x128xbf16>, vector<128x64xbf16>, vector<16x64xf32> -> vector<16x64xf32>
    %31 = arith.addf %25, %30 : vector<16x64xf32>
    %c0_24 = arith.constant 0 : index
    %c0_25 = arith.constant 0 : index
    %32 = vector.load %arg7[%c0_24, %c0_25] : memref<1x64xf32, #tpu.memory_space<vmem>>, vector<1x64xf32>
    %33 = vector.broadcast %32 : vector<1x64xf32> to vector<16x64xf32>
    %34 = arith.mulf %31, %33 : vector<16x64xf32>
    %c0_26 = arith.constant 0 : index
    %c0_27 = arith.constant 0 : index
    %35 = vector.load %arg8[%c0_26, %c0_27] : memref<1x64xf32, #tpu.memory_space<vmem>>, vector<1x64xf32>
    %36 = vector.broadcast %35 : vector<1x64xf32> to vector<16x64xf32>
    %37 = arith.addf %34, %36 : vector<16x64xf32>
    %cst_28 = arith.constant 0.000000e+00 : f32
    %38 = vector.broadcast %cst_28 : f32 to vector<16x64xf32>
    %39 = arith.maximumf %37, %38 : vector<16x64xf32>
    %40 = tpu.concatenate %1, %39, %1 in 0 : vector<1x64xf32>, vector<16x64xf32>, vector<1x64xf32> -> vector<18x64xf32>
    %41 = vector.extract_strided_slice %40 {offsets = [0, 0], sizes = [16, 64], strides = [1, 1]} : vector<18x64xf32> to vector<16x64xf32>
    %42 = arith.truncf %41 : vector<16x64xf32> to vector<16x64xbf16>
    %c0_29 = arith.constant 0 : index
    %c0_30 = arith.constant 0 : index
    %c0_31 = arith.constant 0 : index
    %43 = vector.load %arg9[%c0_29, %c0_30, %c0_31] : memref<3x64x64xbf16, #tpu.memory_space<vmem>>, vector<1x64x64xbf16>
    %44 = vector.shape_cast %43 : vector<1x64x64xbf16> to vector<64x64xbf16>
    %cst_32 = arith.constant dense<0.000000e+00> : vector<16x64xf32>
    %45 = tpu.matmul %42, %44, %cst_32 {dimension_numbers = #tpu.dot_dimension_numbers<[1], [0], [0], [1], [0, 0, 1, 1], [], []>} : vector<16x64xbf16>, vector<64x64xbf16>, vector<16x64xf32> -> vector<16x64xf32>
    %46 = vector.extract_strided_slice %40 {offsets = [1, 0], sizes = [16, 64], strides = [1, 1]} : vector<18x64xf32> to vector<16x64xf32>
    %47 = arith.truncf %46 : vector<16x64xf32> to vector<16x64xbf16>
    %c1_33 = arith.constant 1 : index
    %c0_34 = arith.constant 0 : index
    %c0_35 = arith.constant 0 : index
    %48 = vector.load %arg9[%c1_33, %c0_34, %c0_35] : memref<3x64x64xbf16, #tpu.memory_space<vmem>>, vector<1x64x64xbf16>
    %49 = vector.shape_cast %48 : vector<1x64x64xbf16> to vector<64x64xbf16>
    %cst_36 = arith.constant dense<0.000000e+00> : vector<16x64xf32>
    %50 = tpu.matmul %47, %49, %cst_36 {dimension_numbers = #tpu.dot_dimension_numbers<[1], [0], [0], [1], [0, 0, 1, 1], [], []>} : vector<16x64xbf16>, vector<64x64xbf16>, vector<16x64xf32> -> vector<16x64xf32>
    %51 = arith.addf %45, %50 : vector<16x64xf32>
    %52 = vector.extract_strided_slice %40 {offsets = [2, 0], sizes = [16, 64], strides = [1, 1]} : vector<18x64xf32> to vector<16x64xf32>
    %53 = arith.truncf %52 : vector<16x64xf32> to vector<16x64xbf16>
    %c2_37 = arith.constant 2 : index
    %c0_38 = arith.constant 0 : index
    %c0_39 = arith.constant 0 : index
    %54 = vector.load %arg9[%c2_37, %c0_38, %c0_39] : memref<3x64x64xbf16, #tpu.memory_space<vmem>>, vector<1x64x64xbf16>
    %55 = vector.shape_cast %54 : vector<1x64x64xbf16> to vector<64x64xbf16>
    %cst_40 = arith.constant dense<0.000000e+00> : vector<16x64xf32>
    %56 = tpu.matmul %53, %55, %cst_40 {dimension_numbers = #tpu.dot_dimension_numbers<[1], [0], [0], [1], [0, 0, 1, 1], [], []>} : vector<16x64xbf16>, vector<64x64xbf16>, vector<16x64xf32> -> vector<16x64xf32>
    %57 = arith.addf %51, %56 : vector<16x64xf32>
    %c0_41 = arith.constant 0 : index
    %c0_42 = arith.constant 0 : index
    %58 = vector.load %arg10[%c0_41, %c0_42] : memref<1x64xf32, #tpu.memory_space<vmem>>, vector<1x64xf32>
    %59 = vector.broadcast %58 : vector<1x64xf32> to vector<16x64xf32>
    %60 = arith.mulf %57, %59 : vector<16x64xf32>
    %c0_43 = arith.constant 0 : index
    %c0_44 = arith.constant 0 : index
    %61 = vector.load %arg11[%c0_43, %c0_44] : memref<1x64xf32, #tpu.memory_space<vmem>>, vector<1x64xf32>
    %62 = vector.broadcast %61 : vector<1x64xf32> to vector<16x64xf32>
    %63 = arith.addf %60, %62 : vector<16x64xf32>
    %cst_45 = arith.constant 0.000000e+00 : f32
    %64 = vector.broadcast %cst_45 : f32 to vector<16x64xf32>
    %65 = arith.maximumf %63, %64 : vector<16x64xf32>
    %c0_46 = arith.constant 0 : index
    %c0_47 = arith.constant 0 : index
    %c0_48 = arith.constant 0 : index
    %66 = vector.load %arg12[%c0_46, %c0_47, %c0_48] : memref<1x16x64xf32, #tpu.memory_space<vmem>>, vector<1x16x64xf32>
    %67 = vector.shape_cast %66 : vector<1x16x64xf32> to vector<16x64xf32>
    %68 = vector.shape_cast %65 : vector<16x64xf32> to vector<1x16x64xf32>
    tpu.vector_store %arg12[%c0_46, %c0_47, %c0_48], %68 {strides = array<i32>} : memref<1x16x64xf32, #tpu.memory_space<vmem>>, vector<1x16x64xf32>,
    return
  }
  func.func @transform_0(%arg0: i32) -> (i32, i32, i32) {
    %c0_i32 = arith.constant 0 : i32
    %c0_i32_0 = arith.constant 0 : i32
    %c0_i32_1 = arith.constant 0 : i32
    return %arg0, %c0_i32, %c0_i32_0 : i32, i32, i32
  }
  func.func @transform_1(%arg0: i32) -> (i32, i32, i32) {
    %c0_i32 = arith.constant 0 : i32
    %c0_i32_0 = arith.constant 0 : i32
    %c0_i32_1 = arith.constant 0 : i32
    return %arg0, %c0_i32, %c0_i32_0 : i32, i32, i32
  }
  func.func @transform_2(%arg0: i32) -> (i32, i32) {
    %c0_i32 = arith.constant 0 : i32
    %c0_i32_0 = arith.constant 0 : i32
    %c0_i32_1 = arith.constant 0 : i32
    return %c0_i32, %c0_i32_0 : i32, i32
  }
  func.func @transform_3(%arg0: i32) -> (i32, i32) {
    %c0_i32 = arith.constant 0 : i32
    %c0_i32_0 = arith.constant 0 : i32
    %c0_i32_1 = arith.constant 0 : i32
    return %c0_i32, %c0_i32_0 : i32, i32
  }
  func.func @transform_4(%arg0: i32) -> (i32, i32) {
    %c0_i32 = arith.constant 0 : i32
    %c0_i32_0 = arith.constant 0 : i32
    %c0_i32_1 = arith.constant 0 : i32
    return %c0_i32, %c0_i32_0 : i32, i32
  }
  func.func @transform_5(%arg0: i32) -> (i32, i32, i32) {
    %c0_i32 = arith.constant 0 : i32
    %c0_i32_0 = arith.constant 0 : i32
    %c0_i32_1 = arith.constant 0 : i32
    %c0_i32_2 = arith.constant 0 : i32
    return %c0_i32, %c0_i32_0, %c0_i32_1 : i32, i32, i32
  }
  func.func @transform_6(%arg0: i32) -> (i32, i32) {
    %c0_i32 = arith.constant 0 : i32
    %c0_i32_0 = arith.constant 0 : i32
    %c0_i32_1 = arith.constant 0 : i32
    return %c0_i32, %c0_i32_0 : i32, i32
  }
  func.func @transform_7(%arg0: i32) -> (i32, i32) {
    %c0_i32 = arith.constant 0 : i32
    %c0_i32_0 = arith.constant 0 : i32
    %c0_i32_1 = arith.constant 0 : i32
    return %c0_i32, %c0_i32_0 : i32, i32
  }
  func.func @transform_8(%arg0: i32) -> (i32, i32, i32) {
    %c0_i32 = arith.constant 0 : i32
    %c0_i32_0 = arith.constant 0 : i32
    %c0_i32_1 = arith.constant 0 : i32
    %c0_i32_2 = arith.constant 0 : i32
    return %c0_i32, %c0_i32_0, %c0_i32_1 : i32, i32, i32
  }
  func.func @transform_9(%arg0: i32) -> (i32, i32) {
    %c0_i32 = arith.constant 0 : i32
    %c0_i32_0 = arith.constant 0 : i32
    %c0_i32_1 = arith.constant 0 : i32
    return %c0_i32, %c0_i32_0 : i32, i32
  }
  func.func @transform_10(%arg0: i32) -> (i32, i32) {
    %c0_i32 = arith.constant 0 : i32
    %c0_i32_0 = arith.constant 0 : i32
    %c0_i32_1 = arith.constant 0 : i32
    return %c0_i32, %c0_i32_0 : i32, i32
  }
  func.func @transform_11(%arg0: i32) -> (i32, i32, i32) {
    %c0_i32 = arith.constant 0 : i32
    %c0_i32_0 = arith.constant 0 : i32
    %c0_i32_1 = arith.constant 0 : i32
    return %arg0, %c0_i32, %c0_i32_0 : i32, i32, i32
  }
}

</mosaic_0001>

<bundles_post_ra>
// kernel: tpu_custom_call.1
= control target key start
LH: loop header
LB: loop body
LE: loop exit
PB: predicated region body
PF: predicated region fallthrough
CT: control target
= control target key end

     0   :  { %16 = vsyncpa [#allocation3], 0  ;;  %s2212_s0 = inlined_call_operand.vmem [shape: f32[2,8,64], index: 0, kind: input, shape index: {}]   ;;  %s2213_s1 = inlined_call_operand.vmem [shape: f32[2,16,64], index: 1, kind: input, shape index: {}]   ;;  %s2214_s2 = inlined_call_operand.vmem [shape: f32[16,8], index: 2, kind: input, shape index: {}]   ;;  %s2215_s3 = inlined_call_operand.vmem [shape: f32[64,64], index: 3, kind: input, shape index: {}]   ;;  %s2216_s4 = inlined_call_operand.vmem [shape: f32[1,64], index: 4, kind: input, shape index: {}]   ;;  %s2217_s5 = inlined_call_operand.vmem [shape: bf16[3,128,64], index: 5, kind: input, shape index: {}]   ;;  %s2218_s6 = inlined_call_operand.vmem [shape: f32[1,64], index: 6, kind: input, shape index: {}]   ;;  %s2219_s7 = inlined_call_operand.vmem [shape: f32[1,64], index: 7, kind: input, shape index: {}]   ;;  %s2220_s8 = inlined_call_operand.vmem [shape: bf16[3,64,64], index: 8, kind: input, shape index: {}]   ;;  %s2221_s9 = inlined_call_operand.vmem [shape: f32[1,64], index: 9, kind: input, shape index: {}]   ;;  %s2222_s10 = inlined_call_operand.vmem [shape: f32[1,64], index: 10, kind: input, shape index: {}]   ;;  %s2223_s11 = inlined_call_operand.hbm [shape: f32[2,16,64], index: 11, kind: output, shape index: {}]  }
   0x1   :  { %18 = vsyncpa [#allocation3 + $0x1], 0  ;;  %s1879_s17 = smov 0   ;;  %s1881_s18 = smov 0  }
   0x2   :  { %s1883_s19 = smov 0   ;;  %s1885_s20 = smov 0  }
   0x3 LB: > { %2227 = sst [smem:[#allocation5_spill]] %s1806_s19  ;;  %s1900_s21 = sadd.s32 4294967295, %s1810_s20   ;;  %s1810_s20 = sphi %s1885_s20, %s2232_s20   ;;  %s1806_s19 = sphi %s1883_s19, %s2234_s19   ;;  %s1802_s18 = sphi %s1881_s18, %s2236_s18   ;;  %s1798_s17 = sphi %s1879_s17, %s2235_s17  }
   0x4   : > { %s1340_s22 = sadd.s32 4294967294, %s1810_s20   ;;  %s1904_s23 = sadd.s32 1, %s1810_s20  }
   0x5   : > { %2228 = sst [smem:[#allocation6_spill]] %s1904_s23  ;;  %s272_s24 = sadd.s32 1, %s1806_s19 }
   0x6   : > { %s269_s25 = ssub.s32 %s1810_s20, %s1904_s23  ;;  %p282_p0 = scmp.ne.s32.totalorder %s1806_s19, %s1802_s18 }
   0x7   : > { %p270_p1 = scmp.eq.s32.totalorder %s269_s25, 0  ;;  %p283_p2 = scmp.eq.s32.totalorder %s1900_s21, 1 }
   0x8   : > { %p288_p3 = scmp.ne.s32.totalorder %s1802_s18, %s1798_s17  ;;  %p289_p4 = scmp.eq.s32.totalorder %s1340_s22, 1 }
   0x9   : > { %s1915_s26 = scalar_select %p270_p1, %s1806_s19, %s272_s24  }
   0xa   : > { %p1917_p5 = por %p283_p2, %p282_p0  ;;  %p1921_p6 = por %p289_p4, %p288_p3 }
   0xb   : > { %2229 = sst [smem:[#allocation7_spill]] %s1915_s26  ;;  %p1343_p7 = scmp.ge.s32.totalorder %s1810_s20, 1 }
   0xc   : > { %p349_p8 = scmp.lt.s32.totalorder %s1810_s20, 3 }
   0xe   : > { %p350_p9 = pnand %p1343_p7, %p349_p8 }
   0xf   : > { %p393_p10 = scmp.lt.s32.totalorder (!%p350_p9), %s1900_s21, 1  ;;  %v404_v0 = vld [vmem:[%s2214_s2] sm:$0xff] (!%p350_p9)  ;;  %vm406_vm0 = vcmask (!%p350_p9), 64512   ;;  %v489_v2 = vld [vmem:[%s2215_s3 + $0x8] sm:$0xff] (!%p350_p9)  ;;  %v490_v3 = vld [vmem:[%s2215_s3 + $0x10] sm:$0xff] (!%p350_p9)  ;;  %vm503_vm1 = vcmask (!%p350_p9), 523264  }
  0x10   : > { %353 = sbr.rel (%p350_p9) target bundleno = 1154 (0x482), region = 64  ;;  %1512 = vmatprep.mubr.msk.f32.mxu1 (!%p350_p9), %vm406_vm0, %v404_v0  ;;  %v488_v1 = vld [vmem:[%s2215_s3] sm:$0xff] (!%p350_p9)  ;;  %v405_v4 = vld [vmem:[%s2214_s2 + $0x8] sm:$0xff] (!%p350_p9)  ;;  %v491_v5 = vld [vmem:[%s2215_s3 + $0x18] sm:$0xff] (!%p350_p9)  ;;  %v1812_v18 = vmov (!%p350_p9), 0.0   ;;  %vm1813_vm2 = vmmov (!%p350_p9), 0  }
  0x11   : > { %v1630_v6 = vpack.c.bf16 (!%p350_p9), %v489_v2, %v488_v1  ;;  %v492_v8 = vld [vmem:[%s2215_s3 + $0x20] sm:$0xff] (!%p350_p9)  ;;  %v493_v9 = vld [vmem:[%s2215_s3 + $0x28] sm:$0xff] (!%p350_p9)  ;;  %v1634_v10 = vpack.c.bf16 (!%p350_p9), %v491_v5, %v490_v3  ;;  %v494_v11 = vld [vmem:[%s2215_s3 + $0x30] sm:$0xff] (!%p350_p9)  ;;  %1534 = vmatprep.subr.bf16.mxu0 (!%p350_p9), %v1812_v18  ;;  %1550 = vmatprep.mubr.msk.bf16.mxu0 (!%p350_p9), %vm1813_vm2, %v1812_v18  ;;  %s1814_s22 = smov (!%p350_p9), 64   ;;  %vm599_vm3 = vcmask (!%p350_p9), 1040384   ;;  %vm854_vm4 = vcmask (!%p350_p9), 1046528  }
  0x12   : > { %v495_v12 = vld [vmem:[%s2215_s3 + $0x38] sm:$0xff] (!%p350_p9)  ;;  %v1638_v13 = vpack.c.bf16 (!%p350_p9), %v493_v9, %v492_v8  ;;  %v1712_v17 = vld [vmem:[%s2217_s5 + $0x40] sm:$0xff] (!%p350_p9)   ;;  %v1713_v19 = vld [vmem:[%s2217_s5 + $0x48] sm:$0xff] (!%p350_p9)   ;;  %vm643_vm5 = vsmask.f32 (!%p350_p9), 7424  ;;  %vm1815_vm7 = vmmov (!%p350_p9), 1  }
  0x13   : > { %v1642_v14 = vpack.c.bf16 (!%p350_p9), %v495_v12, %v494_v11  ;;  %1535 = vmatpush3.bf16.msra.mxu0 (!%p350_p9), %v1712_v17  ;;  %v1714_v20 = vld [vmem:[%s2217_s5 + $0x50] sm:$0xff] (!%p350_p9)   ;;  %v1715_v21 = vld [vmem:[%s2217_s5 + $0x58] sm:$0xff] (!%p350_p9)   ;;  %v1716_v22 = vld [vmem:[%s2217_s5 + $0x60] sm:$0xff] (!%p350_p9)  }
  0x14   : > { %1536 = vmatprep.subr.bf16.mxu0 (!%p350_p9), %v1812_v18  ;;  %v1717_v23 = vld [vmem:[%s2217_s5 + $0x68] sm:$0xff] (!%p350_p9)   ;;  %v1350_v24 = vld [vmem:[%s2216_s4] ss:$0 sm:$0xff] (!%p350_p9)  ;;  %v1718_v25 = vld [vmem:[%s2217_s5 + $0x70] sm:$0xff] (!%p350_p9)  }
  0x15   : > { %v1719_v27 = vld [vmem:[%s2217_s5 + $0x78] sm:$0xff] (!%p350_p9)   ;;  %v1720_v55 = vld [vmem:[%s2217_s5] sm:$0xff] (!%p350_p9)   ;;  %v1721_v57 = vld [vmem:[%s2217_s5 + $0x8] sm:$0xff] (!%p350_p9)  }
  0x16   : > { %v1722_v58 = vld [vmem:[%s2217_s5 + $0x10] sm:$0xff] (!%p350_p9)   ;;  %v1723_v59 = vld [vmem:[%s2217_s5 + $0x18] sm:$0xff] (!%p350_p9)   ;;  %v1724_v60 = vld [vmem:[%s2217_s5 + $0x20] sm:$0xff] (!%p350_p9)  }
  0x17   : > { %s1933_s12 = scalar_select %p393_p10, %s1900_s21, 1  ;;  %1537 = vmatpush3.bf16.msra.mxu0 %v1713_v19  ;;  %v1725_v61 = vld [vmem:[%s2217_s5 + $0x28] sm:$0xff]   ;;  %v1726_v62 = vld [vmem:[%s2217_s5 + $0x30] sm:$0xff]   ;;  %v1727_v63 = vld [vmem:[%s2217_s5 + $0x38] sm:$0xff]  }
  0x18   : > { %1538 = vmatprep.subr.bf16.mxu0 %v1812_v18  ;;  %vm1385_vm6 = vmneg %vm599_vm3  ;;  %v1728_v0 = vld [vmem:[%s2217_s5 + $0x80] sm:$0xff]   ;;  %v1729_v2 = vld [vmem:[%s2217_s5 + $0x88] sm:$0xff]  }
  0x19   : > { %s1345_s25 = sshll.u32 %s1933_s12, 3  ;;  %s1453_s24 = sshll.u32 %s1933_s12, 4  ;;  %vm1386_vm8 = vmpackc.low %vm1815_vm7, %vm1385_vm6  ;;  %v1730_v3 = vld [vmem:[%s2217_s5 + $0x90] sm:$0xff]   ;;  %v1732_v5 = vld [vmem:[%s2217_s5 + $0xa0] sm:$0xff]  }
  0x1a   : > { %s396_s23 = scalar_lea.vmem %s2212_s0, %s1345_s25  ;;  %v1735_v8 = vld [vmem:[%s2217_s5 + $0xb8] sm:$0xff]   ;;  %v1736_v9 = vld [vmem:[%s2220_s8 + $0x20] sm:$0xff]   ;;  %v1738_v11 = vld [vmem:[%s2220_s8 + $0x30] sm:$0xff]   ;;  %s1454_s25 = sshll.u32 %s1900_s21, 8 }
  0x1b   : > { %v403_v7 = vld [vmem:[%s396_s23] sm:$0xff]  ;;  %1539 = vmatpush3.bf16.msra.mxu0 %v1714_v20  ;;  %s401_s23 = scalar_lea.vmem %s2213_s1, %s1453_s24  ;;  %v1739_v12 = vld [vmem:[%s2220_s8 + $0x38] sm:$0xff]   ;;  %s2165_s15 = scalar_lea.hbm %s2223_s11, %s1454_s25 }
  0x1c   : > { %1510 = vmatprep.subr.mxu1 %v403_v7  ;;  %1540 = vmatprep.subr.bf16.mxu0 %v1812_v18  ;;  %v585_v32 = vld [vmem:[%s401_s23] sm:$0xff]  ;;  %v586_v33 = vld [vmem:[%s401_s23 + $0x8] sm:$0xff] }
  0x1d   : > { %1511 = vmatpush3.msra.mxu1 %v403_v7  ;;  %v1734_v7 = vld [vmem:[%s2217_s5 + $0xb0] sm:$0xff]  }
  0x1e   : > { %1513 = vmatmul.mubr.msk.f32.vlgmr.msra.gmra.mrb[0].mxu1 %vm406_vm0, %v405_v4  ;;  %1631 = vmatprep.subr.bf16.mxu1 %v1630_v6  ;;  %v1731_v4 = vld [vmem:[%s2217_s5 + $0x98] sm:$0xff]  }
  0x1f   : > { %1633 = vmatpush3.bf16.msra.mxu1 %v1630_v6  ;;  %1541 = vmatpush3.bf16.msra.mxu0 %v1715_v21  ;;  %v1733_v6 = vld [vmem:[%s2217_s5 + $0xa8] sm:$0xff]  }
  0x20   : > { %1635 = vmatprep.subr.bf16.mxu1 %v1634_v10  ;;  %1542 = vmatprep.subr.bf16.mxu0 %v1812_v18 }
  0x23   : > { %1637 = vmatpush3.bf16.msra.mxu1 %v1634_v10  ;;  %1543 = vmatpush3.bf16.msra.mxu0 %v1716_v22  ;;  %v1737_v10 = vld [vmem:[%s2220_s8 + $0x28] sm:$0xff]  }
  0x24   : > { %1639 = vmatprep.subr.bf16.mxu1 %v1638_v13  ;;  %1544 = vmatprep.subr.bf16.mxu0 %v1812_v18 }
  0x27   : > { %1641 = vmatpush3.bf16.msra.mxu1 %v1638_v13  ;;  %1545 = vmatpush3.bf16.msra.mxu0 %v1717_v23  ;;  %v1413_v13 = vld [vmem:[%s2218_s6] ss:$0 sm:$0xff] }
  0x28   : > { %1643 = vmatprep.subr.bf16.mxu1 %v1642_v14  ;;  %1546 = vmatprep.subr.bf16.mxu0 %v1812_v18 }
  0x2b   : > { %1645 = vmatpush3.bf16.msra.mxu1 %v1642_v14  ;;  %1547 = vmatpush3.bf16.msra.mxu0 %v1718_v25 }
  0x2c   : > { %1594 = vmatprep.subr.bf16.mxu1 %v1812_v18  ;;  %1548 = vmatprep.subr.bf16.mxu0 %v1812_v18 }
  0x2f   : > { %1549 = vmatpush3.bf16.msra.mxu0 %v1719_v27 }
  0x30   : > { %1554 = vmatprep.subr.bf16.mxu0 %v1812_v18 }
  0xf1   : > { %v1514_v15 = vpop.f32.mrb[0].mxu1 }
  0xf2   : > { %v479_v16 = vpop.f32.mrb[1].mxu1 }
  0xf3   : > { %1531 = vmatprep.mubr.msk.f32.mxu1 %vm503_vm1, %v479_v16 }
  0xf4   : > { %1532 = vmatmul.mubr.msk.f32.vlgmr.msra.gmra.mrb[2].mxu1 %vm503_vm1, %v1514_v15  ;;  %v1414_v15 = vld [vmem:[%s2219_s7] ss:$0 sm:$0xff] }
  0xf5   : > { %1602 = vmatprep.mubr.msk.bf16.mxu1 %vm1813_vm2, %v1812_v18  ;;  %1595 = vmatpush3.bf16.msra.mxu1 %v1736_v9 }
  0xf6   : > { %1596 = vmatprep.subr.bf16.mxu1 %v1812_v18 }
  0xf9   : > { %1597 = vmatpush3.bf16.msra.mxu1 %v1737_v10 }
  0xfa   : > { %1598 = vmatprep.subr.bf16.mxu1 %v1812_v18 }
  0xfd   : > { %1599 = vmatpush3.bf16.msra.mxu1 %v1738_v11 }
  0xfe   : > { %1600 = vmatprep.subr.bf16.mxu1 %v1812_v18 }
 0x101   : > { %1601 = vmatpush3.bf16.msra.mxu1 %v1739_v12 }
 0x102   : > { %1606 = vmatprep.subr.bf16.mxu1 %v1812_v18 }
 0x1c7   : > { %v1533_v26 = vpop.f32.mrb[2].mxu1 }
 0x1c8   : > { %v582_v28 = vadd.f32 %v1533_v26, %v1350_v24  ;;  %v576_v29 = vpop.f32.mrb[3].mxu1 }
 0x1c9   : > { %v577_v30 = vadd.f32 %v1350_v24, %v576_v29 }
 0x1cb   : > { %v1707_v31 = vpack.i.bf16 %v582_v28, %v577_v30 }
 0x1cd   : > { %1708 = vrot.lane.b32.xlu0 %v1707_v31, %s1814_s22  ;;  %s390_s22 = sand.u32 1, %s1802_s18  }
 0x1ce   : > { %s1344_s24 = sshll.u32 %s390_s22, 4  ;;  %s2171_s21 = scalar_lea.sflag [#allocation3], %s390_s22 }
 0x1cf   : > { %s392_s29 = scalar_lea.vmem [#allocation2], %s1344_s24  ;;  %s1816_s24 = smov [#allocation2]  }
 0x1d0   : > { %s1266_s30 = sshll.u32 %s392_s29, 4  ;;  %s1752_s19 = sshll.u32 %s1816_s24, 4  ;;  %s2167_s30 = int_to_ptr.vmem [resolvable:$true] %s1266_s30  ;;  %s1753_s19 = int_to_ptr.vmem [resolvable:$false] %s1752_s19 }
 0x1d1   : > { %s1748_s16 = scalar_lea.vmem %s2167_s30, 256  ;;  %s1754_s26 = scalar_lea.vmem %s1753_s19, 512 }
 0x1d2   : > { %p1749_p11 = scmp.ne.s32.totalorder %s2167_s30, %s1748_s16  ;;  %p1755_p0 = scmp.lt.s32.totalorder %s2167_s30, %s1753_s19 }
 0x1d3   : > { %p1756_p1 = scmp.lt.s32.totalorder %s1754_s26, %s1748_s16 }
 0x1d4   : > { %p1750_p12 = pnand %p1749_p11, %p1917_p5 }
 0x1d5   : > { %p1757_p2 = por %p1756_p1, %p1755_p0 }
 0x1d6   : > { %p1751_p13 = pneg %p1750_p12 }
 0x1d8   : > { %p1758_p3 = pnand %p1757_p2, %p1751_p13 }
 0x23f   : > { %v1709_v34 = vpop.permute.xlu0 %1708 }
 0x240   : > { %v1711_v35 = vunpack.i.h.bf16 %v1709_v34  ;;  %v1710_v36 = vunpack.i.l.bf16 %v1709_v34 }
 0x242   : > { %v596_v37 = vsel %vm503_vm1, %v586_v33, %v1711_v35  ;;  %v595_v38 = vsel %vm503_vm1, %v585_v32, %v1710_v36 }
 0x243   : > { %v601_v39 = vrot.slane %v596_v37, 7  ;;  %v600_v40 = vrot.slane %v595_v38, 7 }
 0x245   : > { %v607_v41 = vsel %vm599_vm3, %v601_v39, 0.0  ;;  %v602_v42 = vsel %vm599_vm3, %v600_v40, %v601_v39  ;;  %v606_v43 = vsel %vm599_vm3, 0.0, %v600_v40 }
 0x246   : > { %v625_v44 = vpack.c.bf16 %v607_v41, %v607_v41  ;;  %v608_v45 = vpack.c.bf16 %v602_v42, %v606_v43  ;;  %v1387_v1 = vpack.c.bf16 %v602_v42, %v600_v40  ;;  %v1740_v42 = vld [vmem:[%s2220_s8] sm:$0xff]  }
 0x248   : > { %v647_v46 = vshll.u32 %v608_v45, 16  ;;  %v652_v47 = vshll.u32 %v625_v44, 16  ;;  %v855_v48 = vrot.slane %v608_v45, 1  ;;  %v856_v49 = vrot.slane %v625_v44, 1  ;;  %v1741_v44 = vld [vmem:[%s2220_s8 + $0x8] sm:$0xff]  }
 0x249   : > { %v645_v50 = vshrl.u32 %v608_v45, 16  ;;  %v1742_v45 = vld [vmem:[%s2220_s8 + $0x10] sm:$0xff]  }
 0x24a   : > { %v649_v51 = vrot.slane %v647_v46, 1  ;;  %v857_v52 = vsel %vm854_vm4, %v855_v48, %v856_v49  ;;  %v654_v54 = vrot.slane %v652_v47, 1  ;;  %v1743_v46 = vld [vmem:[%s2220_s8 + $0x18] sm:$0xff]   ;;  %v1744_v47 = vld [vmem:[%s2220_s8 + $0x40] sm:$0xff]   ;;  %v1745_v48 = vld [vmem:[%s2220_s8 + $0x48] sm:$0xff]  }
 0x24b   : > { %v1746_v49 = vld [vmem:[%s2220_s8 + $0x50] sm:$0xff]  }
 0x24c   : > { %v650_v53 = vor.u32 %v649_v51, %v645_v50  ;;  %v1747_v50 = vld [vmem:[%s2220_s8 + $0x58] sm:$0xff]   ;;  %v1446_v51 = vld [vmem:[%s2221_s9] ss:$0 sm:$0xff] }
 0x24e   : > { %v655_v56 = vsel %vm643_vm5, %v650_v53, %v654_v54  ;;  %v1447_v53 = vld [vmem:[%s2222_s10] ss:$0 sm:$0xff] }
 0x24f   : > { %1551 = vmatmul.mubr.bf16.vlgmr.msra.gmra.mrb[0].mxu0 %v655_v56 }
 0x250   : > { %1555 = vmatpush3.bf16.msra.mxu0 %v1720_v55  ;;  %1570 = vmatprep.mubr.msk.bf16.mxu0 %vm1813_vm2, %v1812_v18 }
 0x251   : > { %1556 = vmatprep.subr.bf16.mxu0 %v1812_v18 }
 0x254   : > { %1557 = vmatpush3.bf16.msra.mxu0 %v1721_v57 }
 0x255   : > { %1558 = vmatprep.subr.bf16.mxu0 %v1812_v18 }
 0x258   : > { %1559 = vmatpush3.bf16.msra.mxu0 %v1722_v58 }
 0x259   : > { %1560 = vmatprep.subr.bf16.mxu0 %v1812_v18 }
 0x25c   : > { %1561 = vmatpush3.bf16.msra.mxu0 %v1723_v59 }
 0x25d   : > { %1562 = vmatprep.subr.bf16.mxu0 %v1812_v18 }
 0x260   : > { %1563 = vmatpush3.bf16.msra.mxu0 %v1724_v60 }
 0x261   : > { %1564 = vmatprep.subr.bf16.mxu0 %v1812_v18 }
 0x264   : > { %1565 = vmatpush3.bf16.msra.mxu0 %v1725_v61 }
 0x265   : > { %1566 = vmatprep.subr.bf16.mxu0 %v1812_v18 }
 0x268   : > { %1567 = vmatpush3.bf16.msra.mxu0 %v1726_v62 }
 0x269   : > { %1568 = vmatprep.subr.bf16.mxu0 %v1812_v18 }
 0x26c   : > { %1569 = vmatpush3.bf16.msra.mxu0 %v1727_v63 }
 0x26d   : > { %1574 = vmatprep.subr.bf16.mxu0 %v1812_v18 }
 0x26f   : > { %1571 = vmatmul.mubr.msk.bf16.vlgmr.msra.gmra.mrb[0].mxu0 %vm1386_vm8, %v1387_v1 }
 0x270   : > { %1575 = vmatpush3.bf16.msra.mxu0 %v1728_v0  ;;  %1590 = vmatprep.mubr.msk.bf16.mxu0 %vm1813_vm2, %v1812_v18 }
 0x271   : > { %1576 = vmatprep.subr.bf16.mxu0 %v1812_v18 }
 0x274   : > { %1577 = vmatpush3.bf16.msra.mxu0 %v1729_v2 }
 0x275   : > { %1578 = vmatprep.subr.bf16.mxu0 %v1812_v18 }
 0x278   : > { %1579 = vmatpush3.bf16.msra.mxu0 %v1730_v3 }
 0x279   : > { %1580 = vmatprep.subr.bf16.mxu0 %v1812_v18 }
 0x27c   : > { %1581 = vmatpush3.bf16.msra.mxu0 %v1731_v4 }
 0x27d   : > { %1582 = vmatprep.subr.bf16.mxu0 %v1812_v18 }
 0x280   : > { %1583 = vmatpush3.bf16.msra.mxu0 %v1732_v5 }
 0x281   : > { %1584 = vmatprep.subr.bf16.mxu0 %v1812_v18 }
 0x284   : > { %1585 = vmatpush3.bf16.msra.mxu0 %v1733_v6 }
 0x285   : > { %1586 = vmatprep.subr.bf16.mxu0 %v1812_v18 }
 0x288   : > { %1587 = vmatpush3.bf16.msra.mxu0 %v1734_v7 }
 0x289   : > { %1588 = vmatprep.subr.bf16.mxu0 %v1812_v18 }
 0x28c   : > { %1589 = vmatpush3.bf16.msra.mxu0 %v1735_v8 }
 0x28f   : > { %1591 = vmatmul.mubr.bf16.vlgmr.msra.gmra.mrb[0].mxu0 %v857_v52 }
 0x362   : > { %v941_v14 = vpop.f32.mrb[0].mxu0 }
 0x363   : > { %v957_v16 = vmul.f32 %v1413_v13, %v941_v14  ;;  %v1592_v17 = vpop.f32.mrb[1].mxu0 }
 0x364   : > { %v944_v19 = vpop.f32.mrb[2].mxu0 }
 0x365   : > { %v966_v20 = vadd.f32 %v1414_v15, %v957_v16  ;;  %v958_v21 = vmul.f32 %v1413_v13, %v944_v19  ;;  %v1593_v22 = vpop.f32.mrb[3].mxu0 }
 0x367   : > { %v968_v23 = vmax.f32 %v966_v20, 0.0  ;;  %v967_v24 = vadd.f32 %v1414_v15, %v958_v21 }
 0x369   : > { %v972_v25 = vrot.slane %v968_v23, 7  ;;  %v969_v26 = vmax.f32 %v967_v24, 0.0 }
 0x36b   : > { %v973_v27 = vrot.slane %v969_v26, 7  ;;  %v978_v28 = vsel %vm599_vm3, 0.0, %v972_v25 }
 0x36d   : > { %v974_v29 = vsel %vm599_vm3, %v972_v25, %v973_v27  ;;  %v979_v30 = vsel %vm599_vm3, %v973_v27, 0.0 }
 0x36e   : > { %v980_v31 = vpack.c.bf16 %v974_v29, %v978_v28  ;;  %v989_v32 = vpack.c.bf16 %v979_v30, %v979_v30 }
 0x370   : > { %v1007_v33 = vshll.u32 %v989_v32, 16  ;;  %v1158_v34 = vrot.slane %v989_v32, 1  ;;  %v1002_v35 = vshll.u32 %v980_v31, 16  ;;  %v1157_v36 = vrot.slane %v980_v31, 1 }
 0x371   : > { %v1000_v37 = vshrl.u32 %v980_v31, 16 }
 0x372   : > { %v1004_v38 = vrot.slane %v1002_v35, 1  ;;  %v1159_v39 = vsel %vm854_vm4, %v1157_v36, %v1158_v34  ;;  %v1009_v40 = vrot.slane %v1007_v33, 1 }
 0x374   : > { %v1005_v41 = vor.u32 %v1004_v38, %v1000_v37 }
 0x376   : > { %v1010_v43 = vsel %vm643_vm5, %v1005_v41, %v1009_v40 }
 0x377   : > { %1603 = vmatmul.mubr.msk.bf16.vlgmr.msra.gmra.mrb[4].mxu1 %vm503_vm1, %v1010_v43 }
 0x378   : > { %1607 = vmatpush3.bf16.msra.mxu1 %v1740_v42  ;;  %1614 = vmatprep.mubr.msk.bf16.mxu1 %vm1813_vm2, %v1812_v18 }
 0x379   : > { %1608 = vmatprep.subr.bf16.mxu1 %v1812_v18 }
 0x37c   : > { %1609 = vmatpush3.bf16.msra.mxu1 %v1741_v44 }
 0x37d   : > { %1610 = vmatprep.subr.bf16.mxu1 %v1812_v18 }
 0x380   : > { %1611 = vmatpush3.bf16.msra.mxu1 %v1742_v45 }
 0x381   : > { %1612 = vmatprep.subr.bf16.mxu1 %v1812_v18 }
 0x384   : > { %1613 = vmatpush3.bf16.msra.mxu1 %v1743_v46 }
 0x385   : > { %1618 = vmatprep.subr.bf16.mxu1 %v1812_v18 }
 0x387   : > { %1615 = vmatmul.mubr.msk.bf16.vlgmr.msra.gmra.mrb[4].mxu1 %vm503_vm1, %v980_v31 }
 0x388   : > { %1619 = vmatpush3.bf16.msra.mxu1 %v1744_v47  ;;  %1626 = vmatprep.mubr.msk.bf16.mxu1 %vm1813_vm2, %v1812_v18 }
 0x389   : > { %1620 = vmatprep.subr.bf16.mxu1 %v1812_v18 }
 0x38c   : > { %1621 = vmatpush3.bf16.msra.mxu1 %v1745_v48 }
 0x38d   : > { %1622 = vmatprep.subr.bf16.mxu1 %v1812_v18 }
 0x390   : > { %1623 = vmatpush3.bf16.msra.mxu1 %v1746_v49 }
 0x391   : > { %1624 = vmatprep.subr.bf16.mxu1 %v1812_v18 }
 0x394   : > { %1625 = vmatpush3.bf16.msra.mxu1 %v1747_v50 }
 0x397   : > { %1627 = vmatmul.mubr.msk.bf16.vlgmr.msra.gmra.mrb[4].mxu1 %vm503_vm1, %v1159_v39 }
 0x46a   : > { %v1221_v52 = vpop.f32.mrb[4].mxu1 }
 0x46b   : > { %v1237_v54 = vmul.f32 %v1446_v51, %v1221_v52  ;;  %v1628_v55 = vpop.f32.mrb[5].mxu1 }
 0x46c   : > { %v1224_v56 = vpop.f32.mrb[6].mxu1 }
 0x46d   : > { %v1246_v57 = vadd.f32 %v1447_v53, %v1237_v54  ;;  %v1238_v18 = vmul.f32 %v1446_v51, %v1224_v56  ;;  %v1629_v58 = vpop.f32.mrb[7].mxu1 }
 0x46f   : > { %v1248_v59 = vmax.f32 %v1246_v57, 0.0  ;;  %v1247_v60 = vadd.f32 %v1447_v53, %v1238_v18 }
 0x471   : > { %1250 = vst.msk [vmem:[%s392_s29] sm:$0xff] %vm503_vm1, %v1248_v59  ;;  %v1249_v61 = vmax.f32 %v1247_v60, 0.0 }
 0x473   : > { %1251 = vst.msk [vmem:[%s392_s29 + $0x8] sm:$0xff] %vm503_vm1, %v1249_v61 }
 0x474   : > { %1761 = shalt.err (!%p1758_p3)
}
 0x475   : > { %s1762_s22 = scalar_lea.hbm %s2165_s15, 256  ;;  %s1766_s25 = scalar_lea.hbm %s2223_s11, 512 }
 0x476   : > { %p1763_p4 = scmp.ne.s32.totalorder %s2165_s15, %s1762_s22  ;;  %p1767_p9 = scmp.lt.u32.totalorder %s2165_s15, %s2223_s11 }
 0x477   : > { %p1768_p10 = scmp.lt.u32.totalorder %s1766_s25, %s1762_s22  ;;  %p1770_p12 = scmp.lt.u32.totalorder %s1762_s22, %s2165_s15 }
 0x478   : > { %p1764_p7 = pnand %p1763_p4, %p1917_p5 }
 0x479   : > { %p1769_p11 = por %p1768_p10, %p1767_p9 }
 0x47a   : > { %p1765_p8 = pneg %p1764_p7 }
 0x47b   : > { %p1771_p13 = por %p1770_p12, %p1769_p11 }
 0x47d   : > { %p1772_p0 = pnand %p1771_p13, %p1765_p8 }
 0x47f   : > { %1775 = shalt.err (!%p1772_p0)
}
 0x480   : > { %s1817_s14 = smov 128   ;;  %s1818_s16 = smov 8  }
 0x481   : > { %1662 = dma.vmem_to_hbm [thread:$0]  (%p1917_p5), %s2167_s30, 256, %s2165_s15, %s2171_s21, %s1817_s14, %s1817_s14, %s1818_s16  }
 0x482 PF: > { %p1668_p1 = scmp.ge.s32.totalorder %s1810_s20, 2  ;;  %s1281_s24 = sand.u32 1, %s1798_s17  }
 0x483   : > { %s1282_s19 = scalar_lea.sflag [#allocation3], %s1281_s24 }
 0x484   : > { %p1665_p2 = pnand %p1668_p1, %p1921_p6 }
 0x486   : > { %1793 = dma.done.wait (!%p1665_p2), %s1282_s19, 256  }
 0x487   : > { %1795 = vsyncadd (!%p1665_p2), %s1282_s19, 4294967040  ;;  %s2232_s20 = sld [smem:[#allocation6_spill]]  ;;  %s2233_s26 = sld [smem:[#allocation5_spill]] }
 0x488   : > { %s2234_s19 = sld [smem:[#allocation7_spill]]  ;;  %s2235_s17 = smov %s1802_s18 }
 0x48d   : > { %p21_p3 = scmp.ge.s32.totalorder %s2232_s20, 4   ;;  %s2236_s18 = smov %s2233_s26 }
 0x48f   :  { %23 = sbr.rel (!%p21_p3) target bundleno = 3 (0x3), region = 106 }
 0x496   :  { %1287 = vsyncpa [#allocation3], 1 }
 0x497   :  { %1289 = vsyncpa [#allocation3 + $0x1], 1 }

</bundles_post_ra>
